<compile_context>
chip_gen: v7x
topology: tpu7x:2x2x1
jax: 0.10.0
libtpu: 0.0.40
codegen_flags: <defaults>
</compile_context>

<pallas_src>
import functools

import jax
import jax.numpy as jnp
from jax.experimental import pallas as pl
from jax.experimental.pallas import tpu as pltpu

EPS = 1e-6


def _gem_kernel(p_ref, x_ref, o_ref, acc_ref, *, eps, hw_total, hw_blk,
                p_static, mask_tail):
    """One (row_blk, hw_blk) tile: accumulate sum of clamp(x, eps)**p over HW."""
    k = pl.program_id(1)

    @pl.when(k == 0)
    def _init():
        acc_ref[...] = jnp.zeros_like(acc_ref)

    x = jnp.maximum(x_ref[...].astype(jnp.float32), eps)

    if p_static is not None:
        # Integer p known at trace time: pure VPU multiplies, zero EUP work.
        xp = x
        for _ in range(p_static - 1):
            xp = xp * x
    else:
        # Runtime p: x > 0 after the clamp, so x**p == exp(p * log(x)).
        p = p_ref[0]
        xp = jnp.exp(p * jnp.log(x))

    if mask_tail:
        # Last HW block may run past the true spatial extent; zero the tail so
        # the mean divides by the true HW only.
        col = jax.lax.broadcasted_iota(jnp.int32, xp.shape, 1) + k * hw_blk
        xp = jnp.where(col < hw_total, xp, 0.0)

    acc_ref[...] += jnp.sum(xp, axis=-1, keepdims=True)

    @pl.when(k == pl.num_programs(1) - 1)
    def _finalize():
        mean = acc_ref[...] * (1.0 / hw_total)          # mean > 0
        inv_p = (1.0 / p_static) if p_static is not None else (1.0 / p_ref[0])
        o_ref[...] = jnp.exp(jnp.log(mean) * inv_p).astype(o_ref.dtype)


def _static_int_p(p):
    """Return p as a small positive int if trace-time known & integral, else None."""
    try:
        pv = float(jnp.asarray(p).reshape(-1)[0])
    except Exception:            # tracer (under jit/grad) or otherwise unknown
        return None
    pi = int(round(pv))
    if 1 <= pi <= 8 and abs(pv - pi) < 1e-6:
        return pi
    return None


def _choose_blocks(nc, hw, itemsize, tile_bytes, sub):
    """Pick (row_blk, hw_blk): ~tile_bytes per input tile, TPU-tile aligned."""
    if sub * hw * itemsize <= tile_bytes:
        hw_blk = hw                                     # full spatial extent
    else:
        hw_blk = max(128, (tile_bytes // (sub * itemsize)) // 128 * 128)
    row_blk = tile_bytes // (hw_blk * itemsize)
    row_blk = max(sub, (row_blk // sub) * sub)
    row_blk = min(row_blk, ((nc + sub - 1) // sub) * sub)
    return row_blk, hw_blk


def gem_pool(x, p, *, eps=EPS, tile_bytes=2 * 1024 * 1024):
    """GeM pooling.  x: (N, C, H, W); p: scalar / (1,) array.  Returns (N, C)."""
    N, C, H, W = x.shape
    NC, HW = N * C, H * W
    xr = x.reshape(NC, HW)

    itemsize = jnp.dtype(x.dtype).itemsize
    sub = {4: 8, 2: 16, 1: 32}.get(itemsize, 8)         # sublane multiple per dtype
    row_blk, hw_blk = _choose_blocks(NC, HW, itemsize, tile_bytes, sub)
    grid = (pl.cdiv(NC, row_blk), pl.cdiv(HW, hw_blk))

    p_arr = jnp.asarray(p, dtype=jnp.float32).reshape(1)
    kernel = functools.partial(
        _gem_kernel,
        eps=eps,
        hw_total=HW,
        hw_blk=hw_blk,
        p_static=_static_int_p(p),
        mask_tail=(HW % hw_blk != 0),
    )

    out = pl.pallas_call(
        kernel,
        out_shape=jax.ShapeDtypeStruct((NC, 1), x.dtype),
        grid=grid,
        in_specs=[
            pl.BlockSpec(memory_space=pltpu.SMEM),                    # p (scalar)
            pl.BlockSpec((row_blk, hw_blk), lambda i, k: (i, k)),     # x tile
        ],
        out_specs=pl.BlockSpec((row_blk, 1), lambda i, k: (i, 0)),
        scratch_shapes=[pltpu.VMEM((row_blk, 1), jnp.float32)],
        compiler_params=pltpu.CompilerParams(
            dimension_semantics=("parallel", "arbitrary"),
            vmem_limit_bytes=32 * 1024 * 1024,
        ),
    )(p_arr, xr)
    return out.reshape(N, C)


def _gem_ref(x, p_scalar, eps=EPS):
    xp = jnp.maximum(x.astype(jnp.float32), eps) ** p_scalar
    return jnp.mean(xp, axis=(2, 3)) ** (1.0 / p_scalar)


if __name__ == "__main__":
    key = jax.random.PRNGKey(0)

    # Case 1: module-default shapes, default p=3 (trace-time integer fast path).
    N, C, H, W = 2, 4, 16, 16
    x = jax.random.normal(key, (N, C, H, W), dtype=jnp.float32)
    p = jnp.ones((1,), dtype=jnp.float32) * 3.0         # nn.Parameter(ones(1)*3)
    y = jax.block_until_ready(gem_pool(x, p))
    assert y.shape == (N, C)
    ref = _gem_ref(x, p[0])
    assert jnp.allclose(y, ref, rtol=1e-4, atol=1e-6)

    # Case 2: non-integer p + forced small tiles -> exercises the multi-block
    # row grid, the HW reduction axis with accumulator, and the ragged-HW mask.
    N2, C2, H2, W2 = 2, 16, 15, 20                      # HW = 300 (not % 128)
    x2 = jax.random.normal(jax.random.PRNGKey(1), (N2, C2, H2, W2), dtype=jnp.float32)
    p2 = jnp.ones((1,), dtype=jnp.float32) * 2.5
    y2 = jax.block_until_ready(gem_pool(x2, p2, tile_bytes=8 * 128 * 4))
    ref2 = _gem_ref(x2, p2[0])
    assert y2.shape == (N2, C2)
    assert jnp.allclose(y2, ref2, rtol=1e-4, atol=1e-6)

    # Case 3: p as a traced value (learnable parameter under jit) -> runtime-p
    # exp/log path.
    y3 = jax.block_until_ready(jax.jit(gem_pool)(x2, p2))
    assert jnp.allclose(y3, ref2, rtol=1e-4, atol=1e-6)

    print("KERNEL_OK")
</pallas_src>

<mosaic_0001>
module attributes {stable_mosaic.version = 11 : i64} {
  func.func @_gem_kernel(%arg0: i32, %arg1: i32, %arg2: memref<1xf32, #tpu.memory_space<smem>>, %arg3: memref<8x256xf32, #tpu.memory_space<vmem>>, %arg4: memref<8x1xf32, #tpu.memory_space<vmem>>, %arg5: memref<8x1xf32, #tpu.memory_space<vmem>>) attributes {dimension_semantics = [#tpu.dimension_semantics<parallel>, #tpu.dimension_semantics<arbitrary>], iteration_bounds = array<i64: 1, 1>, scalar_prefetch = 0 : i64, scratch_operands = 1 : i64, tpu.core_type = #tpu.core_type<tc>, window_params = [{transform_indices = @transform_0, window_bounds = array<i64: 1>}, {transform_indices = @transform_1, window_bounds = array<i64: 8, 256>}, {transform_indices = @transform_2, window_bounds = array<i64: 8, 1>}]} {
    %c0_i32 = arith.constant 0 : i32
    %0 = arith.cmpi eq, %arg1, %c0_i32 : i32
    %1 = arith.extui %0 : i1 to i32
    %c0_i32_0 = arith.constant 0 : i32
    %2 = arith.cmpi ne, %1, %c0_i32_0 : i32
    scf.if %2 {
      %cst_9 = arith.constant 0.000000e+00 : f32
      %16 = vector.broadcast %cst_9 : f32 to vector<8x1xf32>
      %c0_10 = arith.constant 0 : index
      %c0_11 = arith.constant 0 : index
      %17 = vector.load %arg5[%c0_10, %c0_11] : memref<8x1xf32, #tpu.memory_space<vmem>>, vector<8x1xf32>
      tpu.vector_store %arg5[%c0_10, %c0_11], %16 {strides = array<i32>} : memref<8x1xf32, #tpu.memory_space<vmem>>, vector<8x1xf32>,
    } else {
    }
    %c0 = arith.constant 0 : index
    %c0_1 = arith.constant 0 : index
    %3 = vector.load %arg3[%c0, %c0_1] : memref<8x256xf32, #tpu.memory_space<vmem>>, vector<8x256xf32>
    %cst = arith.constant 9.99999997E-7 : f32
    %4 = vector.broadcast %cst : f32 to vector<8x256xf32>
    %5 = arith.maximumf %3, %4 : vector<8x256xf32>
    %6 = arith.mulf %5, %5 : vector<8x256xf32>
    %7 = arith.mulf %6, %5 : vector<8x256xf32>
    %c0_2 = arith.constant 0 : index
    %c0_3 = arith.constant 0 : index
    %8 = vector.load %arg5[%c0_2, %c0_3] : memref<8x1xf32, #tpu.memory_space<vmem>>, vector<8x1xf32>
    %cst_4 = arith.constant dense<0.000000e+00> : vector<8xf32>
    %9 = vector.multi_reduction <add>, %7, %cst_4 [1] : vector<8x256xf32> to vector<8xf32>
    %10 = vector.shape_cast %9 : vector<8xf32> to vector<8x1xf32>
    %11 = arith.addf %8, %10 : vector<8x1xf32>
    %c0_5 = arith.constant 0 : index
    %c0_6 = arith.constant 0 : index
    %12 = vector.load %arg5[%c0_5, %c0_6] : memref<8x1xf32, #tpu.memory_space<vmem>>, vector<8x1xf32>
    tpu.vector_store %arg5[%c0_5, %c0_6], %11 {strides = array<i32>} : memref<8x1xf32, #tpu.memory_space<vmem>>, vector<8x1xf32>,
    %c0_i32_7 = arith.constant 0 : i32
    %13 = arith.cmpi eq, %arg1, %c0_i32_7 : i32
    %14 = arith.extui %13 : i1 to i32
    %c0_i32_8 = arith.constant 0 : i32
    %15 = arith.cmpi ne, %14, %c0_i32_8 : i32
    scf.if %15 {
      %c0_9 = arith.constant 0 : index
      %c0_10 = arith.constant 0 : index
      %16 = vector.load %arg5[%c0_9, %c0_10] : memref<8x1xf32, #tpu.memory_space<vmem>>, vector<8x1xf32>
      %cst_11 = arith.constant 3.906250e-03 : f32
      %17 = vector.broadcast %cst_11 : f32 to vector<8x1xf32>
      %18 = arith.mulf %16, %17 : vector<8x1xf32>
      %19 = math.log %18 : vector<8x1xf32>
      %cst_12 = arith.constant 0.333333343 : f32
      %20 = vector.broadcast %cst_12 : f32 to vector<8x1xf32>
      %21 = arith.mulf %19, %20 : vector<8x1xf32>
      %22 = math.exp %21 : vector<8x1xf32>
      %c0_13 = arith.constant 0 : index
      %c0_14 = arith.constant 0 : index
      %23 = vector.load %arg4[%c0_13, %c0_14] : memref<8x1xf32, #tpu.memory_space<vmem>>, vector<8x1xf32>
      tpu.vector_store %arg4[%c0_13, %c0_14], %22 {strides = array<i32>} : memref<8x1xf32, #tpu.memory_space<vmem>>, vector<8x1xf32>,
    } else {
    }
    return
  }
  func.func @transform_0(%arg0: i32, %arg1: i32) -> i32 {
    %c0_i32 = arith.constant 0 : i32
    %c0_i32_0 = arith.constant 0 : i32
    return %c0_i32 : i32
  }
  func.func @transform_1(%arg0: i32, %arg1: i32) -> (i32, i32) {
    %c0_i32 = arith.constant 0 : i32
    return %arg0, %arg1 : i32, i32
  }
  func.func @transform_2(%arg0: i32, %arg1: i32) -> (i32, i32) {
    %c0_i32 = arith.constant 0 : i32
    %c0_i32_0 = arith.constant 0 : i32
    return %arg0, %c0_i32 : i32, i32
  }
}

</mosaic_0001>

<bundles_post_ra>
// kernel: tpu_custom_call.1
= control target key start
LH: loop header
LB: loop body
LE: loop exit
PB: predicated region body
PF: predicated region fallthrough
CT: control target
= control target key end

     0   :  { %8 = vsyncpa [#allocation5], 0  ;;  %s91_s9 = smov [#allocation4]   ;;  %s126_s0 = inlined_call_operand.<no memory space> [shape: f32[1], index: 0, kind: input, shape index: {}]   ;;  %s127_s1 = inlined_call_operand.hbm [shape: f32[8,256], index: 1, kind: input, shape index: {}]   ;;  %s128_s2 = inlined_call_operand.vmem [shape: f32[8,1], index: 2, kind: output, shape index: {}]  }
   0x1   :  { %s17_s10 = sshll.u32 %s91_s9, 4  ;;  %s67_s13 = scalar_lea.hbm %s127_s1, 256  ;;  %s18_s10 = int_to_ptr.vmem [resolvable:$true] %s17_s10 }
   0x2   :  { %p68_p0 = scmp.ne.s32.totalorder %s127_s1, %s67_s13  ;;  %p71_p1 = scmp.lt.u32.totalorder %s67_s13, %s127_s1 }
   0x4   :  { %p73_p2 = pnand %p71_p1, %p68_p0 }
   0x6   :  { %76 = shalt.err (!%p73_p2)
}
   0x7   :  { %s77_s17 = scalar_lea.vmem %s18_s10, 256  ;;  %p82_p4 = scmp.lt.s32.totalorder %s18_s10, %s18_s10 }
   0x8   :  { %p78_p3 = scmp.ne.s32.totalorder %s18_s10, %s77_s17  ;;  %p83_p5 = scmp.lt.s32.totalorder %s77_s17, %s77_s17 }
   0xa   :  { %p84_p6 = por %p83_p5, %p82_p4 }
   0xc   :  { %p85_p7 = pnand %p84_p6, %p78_p3 }
   0xe   :  { %88 = shalt.err (!%p85_p7)
}
   0xf   :  { %20 = dma.hbm_to_vmem [thread:$0]  %s127_s1, 256, %s18_s10, [#allocation5]  }
  0x10   :  { %89 = dma.done.wait [#allocation5], 256  }
  0x11   :  { %90 = vsyncadd [#allocation5], 4294967040  ;;  %vm28_vm0 = vcmask 7168   ;;  %v92_v0 = vmov 0.0   ;;  %v30_v1 = vld [vmem:[#allocation4] sm:$0xff]  ;;  %v31_v2 = vld [vmem:[#allocation4 + $0x8] sm:$0xff] }
  0x12   :  { %29 = vst.msk [vmem:[#allocation2] sm:$0xff] %vm28_vm0, %v92_v0  ;;  %v32_v3 = vmax.f32 %v30_v1, 1e-06  ;;  %v33_v4 = vmax.f32 %v31_v2, 1e-06 }
  0x14   :  { %v34_v5 = vmul.f32 %v32_v3, %v32_v3  ;;  %v35_v6 = vmul.f32 %v33_v4, %v33_v4 }
  0x16   :  { %v36_v7 = vmul.f32 %v34_v5, %v32_v3  ;;  %v37_v8 = vmul.f32 %v35_v6, %v33_v4 }
  0x18   :  { %v39_v9 = vadd.f32 %v37_v8, %v36_v7 }
  0x19   :  { %v38_v10 = vld [vmem:[#allocation2] sm:$0xff] }
  0x1a   :  { %40 = vadd.xlane.f32.xlu0 %v39_v9 }
  0xa7   :  { %v41_v11 = vpop.xlane.xlu0 %40 }
  0xa8   :  { %v42_v12 = vadd.f32 %v41_v11, %v38_v10 }
  0xaa   :  { %44 = vst.msk [vmem:[#allocation2] sm:$0xff] %vm28_vm0, %v42_v12 }
  0xb1   :  { %v48_v13 = vld [vmem:[#allocation2] sm:$0xff] }
  0xb2   :  { %v49_v14 = vmul.f32 0.00390625, %v48_v13 }
  0xb4   :  { %63 = vlog2.f32 %v49_v14 }
  0xbe   :  { %v64_v15 = vpop.eup %63 }
  0xbf   :  { %v51_v16 = vmul.f32 0.6931472, %v64_v15 }
  0xc1   :  { %v52_v17 = vmul.f32 0.33333334, %v51_v16 }
  0xc3   :  { %v53_v18 = vmul.f32 1.442695, %v52_v17 }
  0xc5   :  { %65 = vpow2.f32 %v53_v18 }
  0xcf   :  { %v66_v19 = vpop.eup %65 }
  0xd0   :  { %55 = vst.msk [vmem:[%s128_s2] sm:$0xff] %vm28_vm0, %v66_v19 }
  0xd1   :  { %60 = vsyncpa [#allocation5], 1 }

</bundles_post_ra>
